<compile_context>
chip_gen: v7x
topology: tpu7x:2x2x1
jax: 0.10.0
libtpu: 0.0.40
codegen_flags: <defaults>
</compile_context>

<pallas_src>
import functools
import math

import jax
import jax.numpy as jnp
from jax.experimental import pallas as pl
from jax.experimental.pallas import tpu as pltpu

EPS = 1e-5  # PyTorch InstanceNorm1d default eps


def _round_up(v, m):
    return -(-v // m) * m


# ----------------------------------------------------------------------------- kernel


def _block_kernel(x_ref, w_ref, o_ref, *, ksize, pad_left, seq, nseg, compute_dtype):
    # x_ref: (C_pad, BL)        activations, batch folded into the lane axis (BL = nseg*seq)
    # w_ref: (C_out, K*C_pad)   lane-dense conv weight, column index = k*C_pad + i
    # o_ref: (C_out, BL)
    f32 = jnp.float32
    hi = jax.lax.Precision.HIGHEST

    x = x_ref[...].astype(f32)
    c, bl = x.shape

    # ---- lane -> (segment, position-in-segment) bookkeeping, generated in-kernel ----
    # floor((lane+0.5)/seq) is exact for bl << 2^22 lanes (blocks here are <= 32768 lanes).
    lane = jax.lax.broadcasted_iota(jnp.int32, (1, bl), 1).astype(f32)
    seg_of_lane = jnp.floor((lane + 0.5) * (1.0 / seq))          # (1, BL) segment id per lane
    pos_in_seg = lane - seg_of_lane * seq                        # (1, BL) 0..seq-1
    seg_rows = jax.lax.broadcasted_iota(jnp.int32, (nseg, bl), 0).astype(f32)
    sb = (seg_rows == seg_of_lane).astype(f32)                   # (nseg, BL) 0/1 segment map

    # ---- InstanceNorm1d (affine=False): fused per-segment mean / E[x^2] ----
    # one reduction matmul over the lane axis + one broadcast-back matmul (both f32 on MXU).
    xx = jnp.concatenate([x, x * x], axis=0)                     # (2C, BL)
    stat_seg = jax.lax.dot_general(
        xx, sb, (((1,), (1,)), ((), ())),
        precision=hi, preferred_element_type=f32) * (1.0 / seq)  # (2C, nseg)
    stat = jax.lax.dot_general(
        stat_seg, sb, (((1,), (0,)), ((), ())),
        precision=hi, preferred_element_type=f32)                # (2C, BL)
    mean, ex2 = stat[:c], stat[c:]
    # TODO(synk): one-pass E[x^2]-mean^2 (even in f32) can lose precision for inputs with a
    # very large DC offset; PyTorch effectively uses a two-pass variance.
    var = jnp.maximum(ex2 - mean * mean, 0.0)
    a = jnp.maximum((x - mean) * jax.lax.rsqrt(var + EPS), 0.0)  # normalize + ReLU

    # ---- im2col: K statically-shifted copies with in-kernel edge masks ('same' zero pad) ----
    parts = []
    for k in range(ksize):                                       # static, short loop
        s = pad_left - k                                         # signed lane shift of tap k
        if s == 0:
            parts.append(a.astype(compute_dtype))
            continue
        shifted = jnp.roll(a, s, axis=1)                         # out[:, j] = a[:, j - s]
        edge = (pos_in_seg >= s) if s > 0 else (pos_in_seg < seq + s)
        parts.append(jnp.where(edge, shifted, 0.0).astype(compute_dtype))
    a_col = jnp.concatenate(parts, axis=0)                       # (K*C_pad, BL) compute_dtype

    # ---- Conv1d (stride=1, padding='same', bias=False): one fused MXU matmul ----
    out = jax.lax.dot_general(
        w_ref[...], a_col, (((1,), (0,)), ((), ())),
        precision=hi, preferred_element_type=f32)
    o_ref[...] = out.astype(o_ref.dtype)

    # TODO(synk): dropout1d not implemented (module default dropRate=0.0 -> forward skips it).


# ----------------------------------------------------------------------------- tiling / VMEM


def _vmem_capacity_bytes():
    """Per-TensorCore VMEM capacity; conservative fallback = v7x (64 MiB)."""
    try:
        cap = getattr(pltpu.get_tpu_info(), "vmem_capacity_bytes", None)
        if cap:
            return int(cap)
    except Exception:
        pass
    try:
        kind = jax.devices()[0].device_kind.lower()
        if "v7" in kind:
            return 64 << 20
        if any(t in kind for t in ("v4", "v5", "v6")):
            return 128 << 20
    except Exception:
        pass
    return 64 << 20


def _block_vmem_bytes(bl, c_pad, c_out, ksize, seq, x_bytes, out_bytes, cd_bytes):
    """Rough per-block VMEM footprint (pipelined blocks + in-kernel temporaries)."""
    nseg = bl // seq
    nseg_p = max(_round_up(nseg, 8), 8)
    c_out_p = max(_round_up(c_out, 8), 8)
    b = 2 * x_bytes * c_pad * bl             # double-buffered activation blocks
    b += 2 * out_bytes * c_out_p * bl        # double-buffered output blocks
    b += 4 * c_pad * bl * 6                  # f32 temps: x, x*x, stat bcast (2C), a, roll tmp
    b += 2 * 4 * nseg_p * bl                 # segment map + iota temp (quadratic in bl)
    b += cd_bytes * ksize * c_pad * bl       # a_col im2col stack
    b += 4 * c_out_p * bl                    # f32 conv accumulator before cast
    return int(b * 1.25)                     # slack for relayouts / misc


def _choose_tiling(n, seq, c_pad, c_out, ksize, x_bytes, out_bytes, cd_bytes):
    vmem_cap = _vmem_capacity_bytes()
    request_cap = min(int(vmem_cap * 0.75), 112 << 20)   # 48 MiB on v7x, 96 MiB on v5e/v6e
    search_budget = int(request_cap * 0.65)

    g = math.gcd(seq, 128)
    b_unit = 128 // g                       # minimal batch chunk giving 128-aligned lanes
    unit_lanes = b_unit * seq               # multiple of 128

    def fp(bl):
        return _block_vmem_bytes(bl, c_pad, c_out, ksize, seq, x_bytes, out_bytes, cd_bytes)

    # largest block (in units of unit_lanes) fitting the budget, capped at 32k lanes
    max_units, m = 1, 1
    while m * unit_lanes <= 32768 and fp(m * unit_lanes) <= search_budget:
        max_units = m
        m += 1

    min_units = max(1, -(-1024 // unit_lanes))            # target >= ~1024 lanes per block
    units_needed = -(-n // b_unit)
    # prefer >= 2 grid steps when there is enough work (pipelining + dual-TC split on v7x)
    tile_units = min(units_needed, max_units, max(min_units, -(-units_needed // 2)))
    grid_steps = -(-units_needed // tile_units)
    tile_units = -(-units_needed // grid_steps)            # rebalance to reduce batch padding

    b_tile = tile_units * b_unit
    bl_block = b_tile * seq
    n_pad = grid_steps * b_tile
    vmem_limit = int(min(request_cap, max(8 << 20, 2 * fp(bl_block))))
    # TODO(synk): for a single very long L that alone overflows VMEM, tile over L with a K-1
    # halo (stats pass + conv pass) instead of one full-length block.
    return b_tile, n_pad, bl_block, grid_steps, vmem_limit


# ----------------------------------------------------------------------------- wrapper


def alexnet_basic_block(x, weight, *, compute_dtype=jnp.bfloat16):
    """InstanceNorm1d(affine=False, eps=1e-5) -> ReLU -> Conv1d(stride=1, padding='same',
    bias=False).  x: (N, C_in, L), weight: (C_out, C_in, K) -> (N, C_out, L).

    The conv matmul runs in `compute_dtype` (default bf16: MXU-native on v5e/v6e/v7x with f32
    accumulation — i.e. the conv weight is quantized to bf16). InstanceNorm statistics always
    stay in f32. Pass compute_dtype=jnp.float32 for a full-precision path.
    """
    n, c_in, seq = x.shape
    c_out, c_in_w, ksize = weight.shape
    assert c_in == c_in_w
    pad_left = (ksize - 1) // 2      # PyTorch 'same' (stride 1): extra padding goes on the right

    c_pad = _round_up(c_in, 8)       # sublane-align channels: free im2col concat / matmul layout
    cd_bytes = jnp.dtype(compute_dtype).itemsize
    x_bytes = jnp.dtype(x.dtype).itemsize

    b_tile, n_pad, bl_block, grid_steps, vmem_limit = _choose_tiling(
        n, seq, c_pad, c_out, ksize, x_bytes, x_bytes, cd_bytes)

    # ---- layout plumbing (XLA side, outside the kernel) ----
    # activations: (N, C_in, L) -> (C_pad, N_pad*L); lane axis = batch-folded length.
    xt = jnp.transpose(x, (1, 0, 2))                                  # (C_in, N, L)
    xt = jnp.pad(xt, ((0, c_pad - c_in), (0, n_pad - n), (0, 0)))     # zero pad chans + batch
    x2 = xt.reshape(c_pad, n_pad * seq)
    # weight: (C_out, C_in, K) -> lane-dense (C_out, K*C_pad), column index = k*C_pad + i.
    wt = jnp.transpose(weight, (0, 2, 1))                             # (C_out, K, C_in)
    wt = jnp.pad(wt, ((0, 0), (0, 0), (0, c_pad - c_in)))
    w2 = wt.reshape(c_out, ksize * c_pad).astype(compute_dtype)

    kernel = functools.partial(
        _block_kernel, ksize=ksize, pad_left=pad_left, seq=seq, nseg=b_tile,
        compute_dtype=compute_dtype)

    out2 = pl.pallas_call(
        kernel,
        out_shape=jax.ShapeDtypeStruct((c_out, n_pad * seq), x.dtype),
        grid_spec=pltpu.PrefetchScalarGridSpec(
            num_scalar_prefetch=0,
            grid=(grid_steps,),
            in_specs=[
                pl.BlockSpec((c_pad, bl_block), lambda i: (0, i)),
                pl.BlockSpec((c_out, ksize * c_pad), lambda i: (0, 0)),  # grid-invariant weight
            ],
            out_specs=pl.BlockSpec((c_out, bl_block), lambda i: (0, i)),
        ),
        compiler_params=pltpu.CompilerParams(
            # batch grid axis is embarrassingly parallel.
            # TODO(synk): on v7x, pltpu.CORE_PARALLEL would split this axis across the 2 TCs.
            dimension_semantics=("parallel",),
            vmem_limit_bytes=vmem_limit,
        ),
    )(x2, w2)

    out = out2.reshape(c_out, n_pad, seq)[:, :n, :]
    return jnp.transpose(out, (1, 0, 2))


# ----------------------------------------------------------------------------- reference / test


def _reference(x, weight):
    mean = jnp.mean(x, axis=-1, keepdims=True)
    var = jnp.mean(jnp.square(x - mean), axis=-1, keepdims=True)
    a = jnp.maximum((x - mean) * jax.lax.rsqrt(var + EPS), 0.0)
    return jax.lax.conv_general_dilated(
        a, weight, window_strides=(1,), padding="SAME",
        dimension_numbers=("NCH", "OIH", "NCH"),
        precision=jax.lax.Precision.HIGHEST)


if __name__ == "__main__":
    # small shapes: batch=2, in_channels=4, out_channels=8, seq=16, kernel=3
    N, C_IN, C_OUT, L, K = 2, 4, 8, 16, 3

    key = jax.random.PRNGKey(0)
    kx, kw = jax.random.split(key)
    x = jax.random.normal(kx, (N, C_IN, L), dtype=jnp.float32)

    # PyTorch-style Conv1d init: U(-b, b), b = 1/sqrt(fan_in), fan_in = C_in*K
    bound = 1.0 / math.sqrt(C_IN * K)
    weight = jax.random.uniform(kw, (C_OUT, C_IN, K), dtype=jnp.float32,
                                minval=-bound, maxval=bound)

    ref = jax.block_until_ready(_reference(x, weight))

    # f32 compute path: tight tolerance against the pure-JAX reference.
    out_f32 = jax.block_until_ready(
        alexnet_basic_block(x, weight, compute_dtype=jnp.float32))
    assert out_f32.shape == (N, C_OUT, L)
    assert jnp.allclose(out_f32, ref, atol=2e-4, rtol=2e-4), \
        float(jnp.max(jnp.abs(out_f32 - ref)))

    # default bf16 MXU path (f32 accumulation, f32 stats) — looser tolerance.
    out_bf16 = jax.block_until_ready(alexnet_basic_block(x, weight))
    assert out_bf16.shape == (N, C_OUT, L)
    assert jnp.all(jnp.isfinite(out_bf16))
    assert jnp.allclose(out_bf16, ref, atol=1e-1, rtol=1e-1)

    print("KERNEL_OK")
</pallas_src>

<mosaic_0001>
module attributes {stable_mosaic.version = 11 : i64} {
  func.func @_block_kernel(%arg0: i32, %arg1: memref<8x128xf32, #tpu.memory_space<vmem>>, %arg2: memref<8x24xf32, #tpu.memory_space<vmem>>, %arg3: memref<8x128xf32, #tpu.memory_space<vmem>>) attributes {dimension_semantics = [#tpu.dimension_semantics<parallel>], iteration_bounds = array<i64: 1>, scalar_prefetch = 0 : i64, scratch_operands = 0 : i64, tpu.core_type = #tpu.core_type<tc>, window_params = [{transform_indices = @transform_0, window_bounds = array<i64: 8, 128>}, {pipeline_mode = #tpu.pipeline_mode<synchronous>, transform_indices = @transform_1, window_bounds = array<i64: 8, 24>}, {transform_indices = @transform_2, window_bounds = array<i64: 8, 128>}]} {
    %c0 = arith.constant 0 : index
    %c0_0 = arith.constant 0 : index
    %0 = vector.load %arg1[%c0, %c0_0] : memref<8x128xf32, #tpu.memory_space<vmem>>, vector<8x128xf32>
    %1 = tpu.iota {dimensions = array<i32: 1>} : vector<1x128xi32>
    %2 = arith.sitofp %1 : vector<1x128xi32> to vector<1x128xf32>
    %cst = arith.constant 5.000000e-01 : f32
    %3 = vector.broadcast %cst : f32 to vector<1x128xf32>
    %4 = arith.addf %2, %3 : vector<1x128xf32>
    %cst_1 = arith.constant 6.250000e-02 : f32
    %5 = vector.broadcast %cst_1 : f32 to vector<1x128xf32>
    %6 = arith.mulf %4, %5 : vector<1x128xf32>
    %7 = math.floor %6 : vector<1x128xf32>
    %cst_2 = arith.constant 1.600000e+01 : f32
    %8 = vector.broadcast %cst_2 : f32 to vector<1x128xf32>
    %9 = arith.mulf %7, %8 : vector<1x128xf32>
    %10 = arith.subf %2, %9 : vector<1x128xf32>
    %11 = tpu.iota {dimensions = array<i32: 0>} : vector<8x128xi32>
    %12 = arith.sitofp %11 : vector<8x128xi32> to vector<8x128xf32>
    %13 = vector.broadcast %7 : vector<1x128xf32> to vector<8x128xf32>
    %14 = arith.cmpf oeq, %12, %13 : vector<8x128xf32>
    %15 = arith.extui %14 : vector<8x128xi1> to vector<8x128xi32>
    %16 = arith.sitofp %15 : vector<8x128xi32> to vector<8x128xf32>
    %17 = arith.mulf %0, %0 : vector<8x128xf32>
    %18 = tpu.concatenate %0, %17 in 0 : vector<8x128xf32>, vector<8x128xf32> -> vector<16x128xf32>
    %cst_3 = arith.constant dense<0.000000e+00> : vector<16x8xf32>
    %19 = tpu.matmul %18, %16, %cst_3 {dimension_numbers = #tpu.dot_dimension_numbers<[1], [1], [0], [0], [0, 0, 1, 0], [], []>, precision = #tpu.contract_precision<fp32>} : vector<16x128xf32>, vector<8x128xf32>, vector<16x8xf32> -> vector<16x8xf32>
    %cst_4 = arith.constant 6.250000e-02 : f32
    %20 = vector.broadcast %cst_4 : f32 to vector<16x8xf32>
    %21 = arith.mulf %19, %20 : vector<16x8xf32>
    %cst_5 = arith.constant dense<0.000000e+00> : vector<16x128xf32>
    %22 = tpu.matmul %21, %16, %cst_5 {dimension_numbers = #tpu.dot_dimension_numbers<[1], [0], [0], [1], [0, 0, 1, 1], [], []>, precision = #tpu.contract_precision<fp32>} : vector<16x8xf32>, vector<8x128xf32>, vector<16x128xf32> -> vector<16x128xf32>
    %23 = vector.extract_strided_slice %22 {offsets = [0, 0], sizes = [8, 128], strides = [1, 1]} : vector<16x128xf32> to vector<8x128xf32>
    %24 = vector.extract_strided_slice %22 {offsets = [8, 0], sizes = [8, 128], strides = [1, 1]} : vector<16x128xf32> to vector<8x128xf32>
    %25 = arith.mulf %23, %23 : vector<8x128xf32>
    %26 = arith.subf %24, %25 : vector<8x128xf32>
    %cst_6 = arith.constant 0.000000e+00 : f32
    %27 = vector.broadcast %cst_6 : f32 to vector<8x128xf32>
    %28 = arith.maximumf %26, %27 : vector<8x128xf32>
    %29 = arith.subf %0, %23 : vector<8x128xf32>
    %cst_7 = arith.constant 9.99999974E-6 : f32
    %30 = vector.broadcast %cst_7 : f32 to vector<8x128xf32>
    %31 = arith.addf %28, %30 : vector<8x128xf32>
    %32 = math.rsqrt %31 : vector<8x128xf32>
    %33 = arith.mulf %29, %32 : vector<8x128xf32>
    %cst_8 = arith.constant 0.000000e+00 : f32
    %34 = vector.broadcast %cst_8 : f32 to vector<8x128xf32>
    %35 = arith.maximumf %33, %34 : vector<8x128xf32>
    %36 = vector.extract_strided_slice %35 {offsets = [0, 127], sizes = [8, 1], strides = [1, 1]} : vector<8x128xf32> to vector<8x1xf32>
    %37 = vector.extract_strided_slice %35 {offsets = [0, 0], sizes = [8, 127], strides = [1, 1]} : vector<8x128xf32> to vector<8x127xf32>
    %38 = tpu.concatenate %36, %37 in 1 : vector<8x1xf32>, vector<8x127xf32> -> vector<8x128xf32>
    %cst_9 = arith.constant 1.000000e+00 : f32
    %39 = vector.broadcast %cst_9 : f32 to vector<1x128xf32>
    %40 = arith.cmpf oge, %10, %39 : vector<1x128xf32>
    %cst_10 = arith.constant 0.000000e+00 : f32
    %41 = vector.shape_cast %40 : vector<1x128xi1> to vector<1x128xi1>
    %42 = vector.broadcast %41 : vector<1x128xi1> to vector<8x128xi1>
    %43 = vector.broadcast %cst_10 : f32 to vector<8x128xf32>
    %44 = arith.select %42, %38, %43 : vector<8x128xi1>, vector<8x128xf32>
    %45 = vector.extract_strided_slice %35 {offsets = [0, 1], sizes = [8, 127], strides = [1, 1]} : vector<8x128xf32> to vector<8x127xf32>
    %46 = vector.extract_strided_slice %35 {offsets = [0, 0], sizes = [8, 1], strides = [1, 1]} : vector<8x128xf32> to vector<8x1xf32>
    %47 = tpu.concatenate %45, %46 in 1 : vector<8x127xf32>, vector<8x1xf32> -> vector<8x128xf32>
    %cst_11 = arith.constant 1.500000e+01 : f32
    %48 = vector.broadcast %cst_11 : f32 to vector<1x128xf32>
    %49 = arith.cmpf olt, %10, %48 : vector<1x128xf32>
    %cst_12 = arith.constant 0.000000e+00 : f32
    %50 = vector.shape_cast %49 : vector<1x128xi1> to vector<1x128xi1>
    %51 = vector.broadcast %50 : vector<1x128xi1> to vector<8x128xi1>
    %52 = vector.broadcast %cst_12 : f32 to vector<8x128xf32>
    %53 = arith.select %51, %47, %52 : vector<8x128xi1>, vector<8x128xf32>
    %54 = tpu.concatenate %44, %35, %53 in 0 : vector<8x128xf32>, vector<8x128xf32>, vector<8x128xf32> -> vector<24x128xf32>
    %c0_13 = arith.constant 0 : index
    %c0_14 = arith.constant 0 : index
    %55 = vector.load %arg2[%c0_13, %c0_14] : memref<8x24xf32, #tpu.memory_space<vmem>>, vector<8x24xf32>
    %cst_15 = arith.constant dense<0.000000e+00> : vector<8x128xf32>
    %56 = tpu.matmul %55, %54, %cst_15 {dimension_numbers = #tpu.dot_dimension_numbers<[1], [0], [0], [1], [0, 0, 1, 1], [], []>, precision = #tpu.contract_precision<fp32>} : vector<8x24xf32>, vector<24x128xf32>, vector<8x128xf32> -> vector<8x128xf32>
    %c0_16 = arith.constant 0 : index
    %c0_17 = arith.constant 0 : index
    %57 = vector.load %arg3[%c0_16, %c0_17] : memref<8x128xf32, #tpu.memory_space<vmem>>, vector<8x128xf32>
    tpu.vector_store %arg3[%c0_16, %c0_17], %56 {strides = array<i32>} : memref<8x128xf32, #tpu.memory_space<vmem>>, vector<8x128xf32>,
    return
  }
  func.func @transform_0(%arg0: i32) -> (i32, i32) {
    %c0_i32 = arith.constant 0 : i32
    %c0_i32_0 = arith.constant 0 : i32
    return %c0_i32, %arg0 : i32, i32
  }
  func.func @transform_1(%arg0: i32) -> (i32, i32) {
    %c0_i32 = arith.constant 0 : i32
    %c0_i32_0 = arith.constant 0 : i32
    %c0_i32_1 = arith.constant 0 : i32
    return %c0_i32, %c0_i32_0 : i32, i32
  }
  func.func @transform_2(%arg0: i32) -> (i32, i32) {
    %c0_i32 = arith.constant 0 : i32
    %c0_i32_0 = arith.constant 0 : i32
    return %c0_i32, %arg0 : i32, i32
  }
}

</mosaic_0001>

<bundles_post_ra>
// kernel: tpu_custom_call.1
= control target key start
LH: loop header
LB: loop body
LE: loop exit
PB: predicated region body
PF: predicated region fallthrough
CT: control target
= control target key end

     0   :  { %7 = vsyncpa [#allocation3], 0  ;;  %s2015_s0 = inlined_call_operand.hbm [shape: f32[8,128], index: 0, kind: input, shape index: {}]   ;;  %s2016_s1 = inlined_call_operand.hbm [shape: f32[8,24], index: 1, kind: input, shape index: {}]   ;;  %s2017_s2 = inlined_call_operand.hbm [shape: f32[8,128], index: 2, kind: output, shape index: {}]  }
   0x1   :  { %8 = vsyncpa [#allocation6], 0 }
   0x2   :  { %9 = vsyncpa [#allocation4], 0  ;;  %s1867_s9 = smov [#allocation2]   ;;  %s1868_s11 = smov [#allocation5]  }
   0x3   :  { %s16_s10 = sshll.u32 %s1867_s9, 4  ;;  %s26_s12 = sshll.u32 %s1868_s11, 4  ;;  %s17_s10 = int_to_ptr.vmem [resolvable:$true] %s16_s10  ;;  %s27_s12 = int_to_ptr.vmem [resolvable:$true] %s26_s12 }
   0x4   :  { %s1795_s15 = scalar_lea.hbm %s2015_s0, 128 }
   0x5   :  { %p1796_p0 = scmp.ne.s32.totalorder %s2015_s0, %s1795_s15  ;;  %p1799_p1 = scmp.lt.u32.totalorder %s1795_s15, %s2015_s0 }
   0x7   :  { %p1801_p2 = pnand %p1799_p1, %p1796_p0 }
   0x9   :  { %1804 = shalt.err (!%p1801_p2)
}
   0xa   :  { %s1805_s20 = scalar_lea.vmem %s17_s10, 128  ;;  %p1810_p4 = scmp.lt.s32.totalorder %s17_s10, %s17_s10 }
   0xb   :  { %p1806_p3 = scmp.ne.s32.totalorder %s17_s10, %s1805_s20  ;;  %p1811_p5 = scmp.lt.s32.totalorder %s1805_s20, %s1805_s20 }
   0xd   :  { %p1812_p6 = por %p1811_p5, %p1810_p4 }
   0xf   :  { %p1813_p7 = pnand %p1812_p6, %p1806_p3 }
  0x11   :  { %1816 = shalt.err (!%p1813_p7)
}
  0x12   :  { %19 = dma.hbm_to_vmem [thread:$0]  %s2015_s0, 128, %s17_s10, [#allocation3]  }
  0x13   :  { %s1817_s25 = scalar_lea.hbm %s2016_s1, 128 }
  0x14   :  { %p1818_p8 = scmp.ne.s32.totalorder %s2016_s1, %s1817_s25  ;;  %p1821_p9 = scmp.lt.u32.totalorder %s1817_s25, %s2016_s1 }
  0x16   :  { %p1823_p10 = pnand %p1821_p9, %p1818_p8 }
  0x18   :  { %1826 = shalt.err (!%p1823_p10)
}
  0x19   :  { %s1827_s30 = scalar_lea.vmem %s27_s12, 128  ;;  %p1832_p12 = scmp.lt.s32.totalorder %s27_s12, %s27_s12 }
  0x1a   :  { %p1828_p11 = scmp.ne.s32.totalorder %s27_s12, %s1827_s30  ;;  %p1833_p13 = scmp.lt.s32.totalorder %s1827_s30, %s1827_s30 }
  0x1c   :  { %p1834_p0 = por %p1833_p13, %p1832_p12 }
  0x1e   :  { %p1835_p1 = pnand %p1834_p0, %p1828_p11 }
  0x20   :  { %1838 = shalt.err (!%p1835_p1)
}
  0x21   :  { %29 = dma.hbm_to_vmem [thread:$0]  %s2016_s1, 128, %s27_s12, [#allocation6]  }
  0x22   :  { %1861 = dma.done.wait [#allocation3], 128  }
  0x23   :  { %1862 = vsyncadd [#allocation3], 4294967168 }
  0x24   :  { %1863 = dma.done.wait [#allocation6], 128  }
  0x25   :  { %1864 = vsyncadd [#allocation6], 4294967168  ;;  %v37_v0 = vlaneseq  ;;  %v1920_v5 = vld [vmem:[#allocation2] sm:$0xff]  ;;  %v1869_v16 = vmov 1.0   ;;  %v1870_v17 = vmov 0.0   ;;  %vm543_vm1 = vcmask 64512  }
  0x26   :  { %v118_v8 = vand.u32 4294901760, %v1920_v5  ;;  %v51_v9 = vmul.f32 %v1920_v5, %v1920_v5  ;;  %v1871_v54 = vmov 0.0|0.0   ;;  %vm1872_vm2 = vmmov 0   ;;  %s1873_s1 = smov 1   ;;  %s1874_s4 = smov 127   ;;  %v1062_v59 = vld [vmem:[#allocation5] sm:$0xff] }
  0x27   :  { %v1915_v1 = vand.u32 127, %v37_v0  ;;  %v46_v3 = vshrl.u32 %v37_v0, 7  ;;  %vm1063_vm3 = vcmask 195584   ;;  %s1875_s5 = smov [#allocation7]  }
  0x28   :  { %v119_v11 = vsub.f32 %v1920_v5, %v118_v8  ;;  %v128_v12 = vand.u32 4294901760, %v51_v9  ;;  %v1065_v60 = vsel %vm1063_vm3, %v1062_v59, 0  ;;  %s1546_s6 = sshll.u32 %s1875_s5, 4  ;;  %s1547_s6 = int_to_ptr.vmem [resolvable:$true] %s1546_s6 }
  0x29   :  { %v39_v2 = vcvt.s32.f32 %v1915_v1  ;;  %v47_v7 = vcvt.s32.f32 %v46_v3  ;;  %v1135_v62 = vand.u32 4294901760, %v1065_v60  ;;  %s1839_s7 = scalar_lea.vmem %s1547_s6, 128  ;;  %p1844_p3 = scmp.lt.s32.totalorder %s1547_s6, %s1547_s6 }
  0x2a   :  { %v120_v14 = vand.u32 4294901760, %v119_v11  ;;  %v129_v15 = vsub.f32 %v51_v9, %v128_v12  ;;  %p1840_p2 = scmp.ne.s32.totalorder %s1547_s6, %s1839_s7  ;;  %p1845_p4 = scmp.lt.s32.totalorder %s1839_s7, %s1839_s7 }
  0x2b   :  { %v40_v4 = vadd.f32 0.5, %v39_v2  ;;  %v1136_v3 = vsub.f32 %v1065_v60, %v1135_v62 }
  0x2c   :  { %v121_v19 = vsub.f32 %v119_v11, %v120_v14  ;;  %v130_v20 = vand.u32 4294901760, %v129_v15  ;;  %p1846_p5 = por %p1845_p4, %p1844_p3 }
  0x2d   :  { %v1922_v6 = vmul.f32 0.0625, %v40_v4 }
  0x2e   :  { %v122_v22 = vand.u32 4294901760, %v121_v19  ;;  %v131_v23 = vsub.f32 %v129_v15, %v130_v20  ;;  %p1847_p6 = pnand %p1846_p5, %p1840_p2 }
  0x2f   :  { %v42_v10 = vfloor.f32 %v1922_v6 }
  0x30   :  { %1625 = vmatprep.mubr.f32.mxu0 %v122_v22  ;;  %v132_v25 = vand.u32 4294901760, %v131_v23 }
  0x31   :  { %vm1931_vm0 = vcmp.eq.f32.partialorder %v47_v7, %v42_v10  ;;  %v43_v61 = vmul.f32 16.0, %v42_v10 }
  0x32   :  { %1623 = vmatprep.subr.msk.mxu0 %vm1931_vm0, %v1869_v16  ;;  %v1556_v18 = vsel %vm1931_vm0, 1.0, %v1870_v17 }
  0x33   :  { %1624 = vmatpush3.xpose.msk.msra.mxu0 %vm1931_vm0, %v1869_v16  ;;  %v140_v21 = vsub.f32 %v1556_v18, %v1556_v18  ;;  %v44_v63 = vsub.f32 %v39_v2, %v43_v61 }
  0x35   :  { %v141_v24 = vand.u32 4294901760, %v140_v21  ;;  %vm1051_vm4 = vcmp.ge.f32.partialorder %v44_v63, 1.0  ;;  %vm1058_vm5 = vcmp.lt.f32.partialorder %v44_v63, 15.0 }
  0x36   :  { %1626 = vmatmul.mubr.f32.vlgmr.msra.gmra.mrb[0].mxu0 %v132_v25 }
  0x37   :  { %v142_v26 = vsub.f32 %v140_v21, %v141_v24  ;;  %1630 = vmatprep.mubr.f32.mxu0 %v118_v8 }
  0x39   :  { %v143_v27 = vand.u32 4294901760, %v142_v26 }
  0x3b   :  { %1628 = vmatprep.subr.mxu0 %v143_v27  ;;  %1658 = vmatprep.subr.mxu1 %v143_v27 }
  0x3c   :  { %1629 = vmatpush3.xpose.msra.mxu0 %v143_v27  ;;  %1659 = vmatpush3.msra.mxu1 %v143_v27 }
  0x3d   :  { %1633 = vmatprep.subr.mxu0 %v140_v21  ;;  %1663 = vmatprep.subr.mxu1 %v140_v21 }
  0x3f   :  { %1631 = vmatmul.mubr.f32.vlgmr.msra.gmra.mrb[0].mxu0 %v128_v12 }
  0x40   :  { %1634 = vmatpush3.xpose.msra.mxu0 %v140_v21  ;;  %1635 = vmatprep.mubr.f32.mxu0 %v119_v11 }
  0x41   :  { %1638 = vmatprep.subr.msk.mxu0 %vm1931_vm0, %v1869_v16 }
  0x47   :  { %1636 = vmatmul.mubr.f32.vlgmr.msra.gmra.mrb[0].mxu0 %v129_v15 }
  0x48   :  { %1639 = vmatpush3.xpose.msk.msra.mxu0 %vm1931_vm0, %v1869_v16  ;;  %1640 = vmatprep.mubr.f32.mxu0 %v120_v14 }
  0x49   :  { %1643 = vmatprep.subr.mxu0 %v141_v24 }
  0x4f   :  { %1641 = vmatmul.mubr.f32.vlgmr.msra.gmra.mrb[0].mxu0 %v130_v20 }
  0x50   :  { %1644 = vmatpush3.xpose.msra.mxu0 %v141_v24  ;;  %1645 = vmatprep.mubr.f32.mxu0 %v118_v8 }
  0x51   :  { %1648 = vmatprep.subr.msk.mxu0 %vm1931_vm0, %v1869_v16 }
  0x57   :  { %1646 = vmatmul.mubr.f32.vlgmr.msra.gmra.mrb[0].mxu0 %v128_v12 }
  0x58   :  { %1649 = vmatpush3.xpose.msk.msra.mxu0 %vm1931_vm0, %v1869_v16  ;;  %1650 = vmatprep.mubr.f32.mxu0 %v118_v8 }
  0x59   :  { %1653 = vmatprep.subr.msk.mxu0 %vm1931_vm0, %v1869_v16 }
  0x5f   :  { %1651 = vmatmul.mubr.f32.vlgmr.msra.gmra.mrb[0].mxu0 %v128_v12 }
  0x60   :  { %1654 = vmatpush3.msk.msra.mxu0 %vm1931_vm0, %v1869_v16 }
  0x61   :  { %1737 = vmatprep.subr.bf16.mxu0 %v1871_v54 }
 0x132   :  { %v1652_v28 = vpop.f32.mrb[0].mxu0 }
 0x133   :  { %v542_v29 = vmul.f32 0.0625, %v1652_v28  ;;  %v531_v30 = vpop.f32.mrb[1].mxu0 }
 0x134   :  { %v541_v31 = vmul.f32 0.0625, %v531_v30 }
 0x135   :  { %v548_v32 = vsel %vm543_vm1, %v542_v29, 0 }
 0x136   :  { %v626_v33 = vand.u32 4294901760, %v548_v32  ;;  %v545_v34 = vsel %vm543_vm1, %v541_v31, 0 }
 0x137   :  { %v616_v35 = vand.u32 4294901760, %v545_v34 }
 0x138   :  { %v627_v36 = vsub.f32 %v548_v32, %v626_v33 }
 0x139   :  { %v617_v37 = vsub.f32 %v545_v34, %v616_v35  ;;  %1660 = vmatprep.mubr.f32.mxu1 %v616_v35 }
 0x13a   :  { %v628_v38 = vand.u32 4294901760, %v627_v36  ;;  %1661 = vmatmul.mubr.f32.vlgmr.msra.gmra.mrb[0].mxu1 %v626_v33 }
 0x13b   :  { %1665 = vmatprep.mubr.f32.mxu1 %v617_v37  ;;  %1664 = vmatpush3.msra.mxu1 %v140_v21  ;;  %v618_v39 = vand.u32 4294901760, %v617_v37 }
 0x13c   :  { %v629_v40 = vsub.f32 %v627_v36, %v628_v38  ;;  %1668 = vmatprep.subr.msk.mxu1 %vm1931_vm0, %v1869_v16 }
 0x13d   :  { %v619_v41 = vsub.f32 %v617_v37, %v618_v39 }
 0x13e   :  { %v630_v43 = vand.u32 4294901760, %v629_v40 }
 0x13f   :  { %v620_v42 = vand.u32 4294901760, %v619_v41 }
 0x141   :  { %1655 = vmatprep.mubr.f32.mxu0 %v620_v42 }
 0x142   :  { %1656 = vmatmul.mubr.f32.vlgmr.msra.gmra.mrb[2].mxu0 %v630_v43  ;;  %1666 = vmatmul.mubr.f32.vlgmr.msra.gmra.mrb[0].mxu1 %v627_v36 }
 0x143   :  { %1670 = vmatprep.mubr.f32.mxu1 %v618_v39  ;;  %1669 = vmatpush3.msk.msra.mxu1 %vm1931_vm0, %v1869_v16 }
 0x144   :  { %1673 = vmatprep.subr.mxu1 %v141_v24  ;;  %1689 = vmatprep.mubr.msk.f32.mxu0 %vm1872_vm2, %v1870_v17 }
 0x14a   :  { %1671 = vmatmul.mubr.f32.vlgmr.msra.gmra.mrb[0].mxu1 %v628_v38 }
 0x14b   :  { %1675 = vmatprep.mubr.f32.mxu1 %v616_v35  ;;  %1674 = vmatpush3.msra.mxu1 %v141_v24 }
 0x14c   :  { %1678 = vmatprep.subr.msk.mxu1 %vm1931_vm0, %v1869_v16 }
 0x152   :  { %1676 = vmatmul.mubr.f32.vlgmr.msra.gmra.mrb[0].mxu1 %v626_v33 }
 0x153   :  { %1680 = vmatprep.mubr.f32.mxu1 %v616_v35  ;;  %1679 = vmatpush3.msk.msra.mxu1 %vm1931_vm0, %v1869_v16 }
 0x154   :  { %1743 = vmatprep.subr.bf16.mxu1 %v1871_v54 }
 0x15a   :  { %1681 = vmatmul.mubr.f32.vlgmr.msra.gmra.mrb[0].mxu1 %v626_v33 }
 0x15b   :  { %1707 = vmatprep.mubr.msk.f32.mxu1 %vm1872_vm2, %v1870_v17 }
 0x215   :  { %v1657_v44 = vpop.f32.mrb[2].mxu0 }
 0x216   :  { %v622_v45 = vpop.f32.mrb[3].mxu0 }
 0x22d   :  { %v1682_v46 = vpop.f32.mrb[0].mxu1 }
 0x22e   :  { %v1755_v47 = vadd.f32 %v1682_v46, %v1657_v44  ;;  %v1029_v48 = vpop.f32.mrb[1].mxu1 }
 0x22f   :  { %v1756_v49 = vadd.f32 %v1029_v48, %v622_v45 }
 0x231   :  { %v1039_v50 = vmul.f32 %v1756_v49, %v1756_v49  ;;  %v1042_v55 = vsub.f32 %v1920_v5, %v1756_v49  ;;  %v1137_v5 = vand.u32 4294901760, %v1136_v3 }
 0x233   :  { %v1040_v51 = vsub.f32 %v1755_v47, %v1039_v50  ;;  %v1138_v12 = vsub.f32 %v1136_v3, %v1137_v5 }
 0x235   :  { %v1041_v52 = vmax.f32 %v1040_v51, 0.0  ;;  %v1139_v2 = vand.u32 4294901760, %v1138_v12 }
 0x237   :  { %v1043_v53 = vadd.f32 1e-05, %v1041_v52 }
 0x239   :  { %1793 = vrsqrt.f32 %v1043_v53 }
 0x243   :  { %v1794_v56 = vpop.eup %1793 }
 0x244   :  { %v1045_v57 = vmul.f32 %v1794_v56, %v1042_v55 }
 0x246   :  { %v1046_v58 = vmax.f32 %v1045_v57, 0.0 }
 0x248   :  { %1048 = vrot.lane.b32.xlu0 %v1046_v58, %s1873_s1  ;;  %v1071_v0 = vand.u32 4294901760, %v1046_v58 }
 0x24a   :  { %v1154_v4 = vsub.f32 %v1046_v58, %v1071_v0 }
 0x24c   :  { %1055 = vrot.lane.b32.xlu0 %v1046_v58, %s1874_s4  ;;  %v1155_v11 = vand.u32 4294901760, %v1154_v4 }
 0x24e   :  { %v1156_v1 = vsub.f32 %v1154_v4, %v1155_v11 }
 0x250   :  { %v1157_v23 = vand.u32 4294901760, %v1156_v1 }
 0x2ba   :  { %v1049_v7 = vpop.permute.xlu0 %1048 }
 0x2bb   :  { %v1054_v8 = vsel %vm1051_vm4, %v1049_v7, 0.0 }
 0x2bc   :  { %v1068_v9 = vand.u32 4294901760, %v1054_v8 }
 0x2be   :  { %v1738_v13 = vpack.c.bf16 %v1071_v0, %v1068_v9  ;;  %v1147_v14 = vsub.f32 %v1054_v8, %v1068_v9  ;;  %v1056_v15 = vpop.permute.xlu0 %1055 }
 0x2bf   :  { %v1061_v6 = vsel %vm1058_vm5, %v1056_v15, 0.0 }
 0x2c0   :  { %v1148_v10 = vand.u32 4294901760, %v1147_v14  ;;  %v1744_v16 = vpack.c.bf16 %v1154_v4, %v1147_v14  ;;  %v1074_v18 = vand.u32 4294901760, %v1061_v6  ;;  %1739 = vmatpush3.bf16.msra.mxu0 %v1738_v13 }
 0x2c1   :  { %1687 = vmatprep.subr.mxu0 %v1870_v17 }
 0x2c2   :  { %v1149_v19 = vsub.f32 %v1147_v14, %v1148_v10  ;;  %v1161_v20 = vsub.f32 %v1061_v6, %v1074_v18  ;;  %1745 = vmatpush3.bf16.msra.mxu1 %v1744_v16  ;;  %v1750_v27 = vpack.c.bf16 %v1155_v11, %v1148_v10 }
 0x2c3   :  { %1705 = vmatprep.subr.mxu1 %v1870_v17 }
 0x2c4   :  { %v1150_v21 = vand.u32 4294901760, %v1149_v19  ;;  %v1162_v22 = vand.u32 4294901760, %v1161_v20  ;;  %1688 = vmatpush3.msra.mxu0 %v1074_v18 }
 0x2c5   :  { %1740 = vmatprep.subr.bf16.mxu0 %v1871_v54  ;;  %1690 = vmatmul.mubr.f32.vlgmr.msra.gmra.mrb[4].mxu0 %v1139_v2 }
 0x2c6   :  { %v1163_v24 = vsub.f32 %v1161_v20, %v1162_v22  ;;  %1706 = vmatpush3.msra.mxu1 %v1161_v20  ;;  %v1741_v25 = vpack.c.bf16 %v1157_v23, %v1150_v21  ;;  %1698 = vmatprep.mubr.msk.f32.mxu0 %vm1872_vm2, %v1870_v17 }
 0x2c7   :  { %1708 = vmatmul.mubr.f32.vlgmr.msra.gmra.mrb[2].mxu1 %v1136_v3  ;;  %1746 = vmatprep.subr.bf16.mxu1 %v1871_v54 }
 0x2c8   :  { %1742 = vmatpush3.bf16.msra.mxu0 %v1741_v25  ;;  %1748 = vmatpush3.bf16.msra.mxu1 %v1738_v13  ;;  %v1164_v26 = vand.u32 4294901760, %v1163_v24 }
 0x2c9   :  { %1696 = vmatprep.subr.mxu0 %v1870_v17  ;;  %1714 = vmatprep.subr.mxu1 %v1870_v17 }
 0x2ca   :  { %1716 = vmatprep.mubr.msk.f32.mxu1 %vm1872_vm2, %v1870_v17 }
 0x2cc   :  { %1697 = vmatpush3.msra.mxu0 %v1164_v26  ;;  %1715 = vmatpush3.msra.mxu1 %v1074_v18 }
 0x2cd   :  { %1749 = vmatprep.subr.bf16.mxu1 %v1871_v54  ;;  %1699 = vmatmul.mubr.f32.vlgmr.msra.gmra.mrb[4].mxu0 %v1135_v62 }
 0x2cf   :  { %1717 = vmatmul.mubr.f32.vlgmr.msra.gmra.mrb[2].mxu1 %v1137_v5 }
 0x2d0   :  { %1751 = vmatpush3.bf16.msra.mxu1 %v1750_v27  ;;  %1725 = vmatprep.mubr.msk.f32.mxu1 %vm1872_vm2, %v1870_v17 }
 0x2d1   :  { %1723 = vmatprep.subr.mxu1 %v1870_v17 }
 0x2d4   :  { %1724 = vmatpush3.msra.mxu1 %v1162_v22 }
 0x2d5   :  { %1752 = vmatprep.subr.bf16.mxu1 %v1871_v54 }
 0x2d7   :  { %1726 = vmatmul.mubr.f32.vlgmr.msra.gmra.mrb[2].mxu1 %v1135_v62 }
 0x2d8   :  { %1754 = vmatpush3.bf16.msra.mxu1 %v1738_v13  ;;  %1734 = vmatprep.mubr.msk.f32.mxu1 %vm1872_vm2, %v1870_v17 }
 0x2d9   :  { %1732 = vmatprep.subr.mxu1 %v1870_v17 }
 0x2dc   :  { %1733 = vmatpush3.msra.mxu1 %v1074_v18 }
 0x2df   :  { %1735 = vmatmul.mubr.f32.vlgmr.msra.gmra.mrb[2].mxu1 %v1135_v62 }
 0x3a0   :  { %v1227_v28 = vpop.f32.mrb[4].mxu0 }
 0x3a1   :  { %v1700_v29 = vpop.f32.mrb[5].mxu0 }
 0x3b2   :  { %v1535_v30 = vpop.f32.mrb[2].mxu1 }
 0x3b3   :  { %v1757_v31 = vadd.f32 %v1535_v30, %v1227_v28  ;;  %v1736_v32 = vpop.f32.mrb[3].mxu1 }
 0x3b5   :  { %1539 = vst [vmem:[#allocation7] sm:$0xff] %v1757_v31 }
 0x3b6   :  { %1850 = shalt.err (!%p1847_p6)
}
 0x3b7   :  { %s1851_s10 = scalar_lea.hbm %s2017_s2, 128 }
 0x3b8   :  { %p1852_p7 = scmp.ne.s32.totalorder %s2017_s2, %s1851_s10  ;;  %p1855_p8 = scmp.lt.u32.totalorder %s1851_s10, %s2017_s2 }
 0x3ba   :  { %p1857_p9 = pnand %p1855_p8, %p1852_p7 }
 0x3bc   :  { %1860 = shalt.err (!%p1857_p9)
}
 0x3bd   :  { %1549 = dma.vmem_to_hbm [thread:$0]  %s1547_s6, 128, %s2017_s2, [#allocation4]  }
 0x3be   :  { %1865 = dma.done.wait [#allocation4], 128  }
 0x3bf   :  { %1866 = vsyncadd [#allocation4], 4294967168 }
 0x3c0   :  { %1553 = vsyncpa [#allocation3], 1 }
 0x3c1   :  { %1554 = vsyncpa [#allocation6], 1 }
 0x3c2   :  { %1555 = vsyncpa [#allocation4], 1 }

</bundles_post_ra>
